<compile_context>
chip_gen: v7x
topology: tpu7x:2x2x1
jax: 0.10.0
libtpu: 0.0.40
codegen_flags: <defaults>
</compile_context>

<pallas_src>
import jax
import jax.numpy as jnp
from jax.experimental import pallas as pl
from jax.experimental.pallas import tpu as pltpu


# ---------------------------------------------------------------------------
# In-kernel helpers
# ---------------------------------------------------------------------------
def _compact_even_lanes(z, n_out):
    """y[..., j] = z[..., 2*j] for j < n_out (lanes >= n_out hold garbage).

    Log2-depth shift/select network: round t shifts data left by 2**t in the
    lanes whose (destination) index has bit t set.  For destination j < n_out
    every intermediate read stays at index <= 2*j < z.shape[-1], so no wrap
    ever reaches a valid lane.  jnp.roll with a static shift lowers to two
    unit-stride slices + a minor-dim concat (XLU lane rotate); the select is
    a VPU op — both are non-critical slots in this HBM-bound kernel.
    """
    lane = jax.lax.broadcasted_iota(jnp.int32, z.shape, z.ndim - 1)
    for t in range((n_out - 1).bit_length()):
        s = 1 << t
        z = jnp.where((lane & s) != 0, jnp.roll(z, -s, axis=-1), z)
    return z


def _dwt_fused_kernel(x_ref, ll_ref, hl_ref, lh_ref, hh_ref):
    # x_ref: (BR, 2W).  Each row is one image row-pair:
    #   lanes [0, W)  = even image row, lanes [W, 2W) = odd image row,
    #   with even/odd image columns interleaved inside each half.
    v = x_ref[...].astype(jnp.float32)
    two_w = v.shape[-1]
    w = two_w // 2
    wh = w // 2

    ve = _compact_even_lanes(v, w)                          # [a_even | b_even]
    vo = _compact_even_lanes(jnp.roll(v, -1, axis=-1), w)   # [a_odd  | b_odd ]

    ae, be = ve[:, :wh], ve[:, wh:w]   # even row / odd row, even columns
    ao, bo = vo[:, :wh], vo[:, wh:w]   # even row / odd row, odd  columns

    se = ae + be
    so = ao + bo
    de = be - ae
    do_ = bo - ao

    dt = ll_ref.dtype
    ll_ref[...] = (0.5 * (se + so)).astype(dt)
    hl_ref[...] = (0.5 * (so - se)).astype(dt)
    lh_ref[...] = (0.5 * (de + do_)).astype(dt)
    hh_ref[...] = (0.5 * (do_ - de)).astype(dt)


def _dwt_butterfly_kernel(x1_ref, x2_ref, x3_ref, x4_ref,
                          ll_ref, hl_ref, lh_ref, hh_ref):
    # Fallback: pure elementwise Haar butterfly (deinterleave done in wrapper).
    x1 = x1_ref[...].astype(jnp.float32)   # even row, even col
    x2 = x2_ref[...].astype(jnp.float32)   # odd  row, even col
    x3 = x3_ref[...].astype(jnp.float32)   # even row, odd  col
    x4 = x4_ref[...].astype(jnp.float32)   # odd  row, odd  col
    s1, s2 = x1 + x2, x3 + x4
    d1, d2 = x2 - x1, x4 - x3
    dt = ll_ref.dtype
    ll_ref[...] = (0.5 * (s1 + s2)).astype(dt)
    hl_ref[...] = (0.5 * (s2 - s1)).astype(dt)
    lh_ref[...] = (0.5 * (d1 + d2)).astype(dt)
    hh_ref[...] = (0.5 * (d2 - d1)).astype(dt)


# ---------------------------------------------------------------------------
# Wrapper
# ---------------------------------------------------------------------------
def _pick_block_rows(n_rows, total_lane_width, esize):
    """Block row count: ~2 MiB of input per block (-> ~8 MiB double-buffered
    VMEM including outputs), rows a multiple of 32, grid kept >= 2 when the
    input is large enough (v7x megacore)."""
    target_elems = (512 * 1024 * 4) // max(esize, 1)
    br = max(1, target_elems // max(total_lane_width, 1))
    if br >= n_rows:
        if n_rows >= 64:
            br = n_rows // 2
        else:
            return n_rows          # tiny input: single full-extent block
    br = (br // 32) * 32
    return max(br, 32) if n_rows >= 32 else n_rows


def dwt(x):
    """Pallas DWT.  x: (N, C, H, W), H and W even.  Returns (LL, HL, LH, HH)."""
    n, c, h, w = x.shape
    assert h % 2 == 0 and w % 2 == 0, "DWT requires even spatial dimensions"
    r2 = n * c * (h // 2)          # number of image row-pairs (flattened)
    wh = w // 2
    esize = jnp.dtype(x.dtype).itemsize
    nel = n * c * h * w

    br = _pick_block_rows(r2, 2 * w, esize)
    grid = (pl.cdiv(r2, br),)
    out_sds = tuple(jax.ShapeDtypeStruct((r2, wh), x.dtype) for _ in range(4))
    out_spec = pl.BlockSpec((br, wh), lambda g: (g, 0))
    params = pltpu.CompilerParams(
        dimension_semantics=("parallel",),
        vmem_limit_bytes=32 * 1024 * 1024,
    )
    cost = pl.CostEstimate(flops=3 * nel, transcendentals=0,
                           bytes_accessed=2 * nel * esize)

    if w % 64 == 0:
        # Single-pass path: read x exactly once; all reorganization in-kernel.
        xp = x.reshape(r2, 2 * w)                       # free reshape
        ll, hl, lh, hh = pl.pallas_call(
            _dwt_fused_kernel,
            out_shape=out_sds,
            grid=grid,
            in_specs=[pl.BlockSpec((br, 2 * w), lambda g: (g, 0))],
            out_specs=(out_spec,) * 4,
            compiler_params=params,
            cost_estimate=cost,
        )(xp)
    else:
        # TODO(synk): sub-128-lane column compaction has no robust Mosaic
        # lowering path; keep the deinterleave as one fused XLA pass here.
        x1 = x[:, :, 0::2, 0::2].reshape(r2, wh)
        x2 = x[:, :, 1::2, 0::2].reshape(r2, wh)
        x3 = x[:, :, 0::2, 1::2].reshape(r2, wh)
        x4 = x[:, :, 1::2, 1::2].reshape(r2, wh)
        in_spec = pl.BlockSpec((br, wh), lambda g: (g, 0))
        ll, hl, lh, hh = pl.pallas_call(
            _dwt_butterfly_kernel,
            out_shape=out_sds,
            grid=grid,
            in_specs=[in_spec] * 4,
            out_specs=(out_spec,) * 4,
            compiler_params=params,
            cost_estimate=cost,
        )(x1, x2, x3, x4)

    rs = lambda t: t.reshape(n, c, h // 2, wh)          # free reshape back
    return rs(ll), rs(hl), rs(lh), rs(hh)


# ---------------------------------------------------------------------------
# Pure-JAX reference (matches the PyTorch dwt_init exactly)
# ---------------------------------------------------------------------------
def dwt_ref(x):
    x01 = x[:, :, 0::2, :] / 2
    x02 = x[:, :, 1::2, :] / 2
    x1 = x01[:, :, :, 0::2]
    x2 = x02[:, :, :, 0::2]
    x3 = x01[:, :, :, 1::2]
    x4 = x02[:, :, :, 1::2]
    return (x1 + x2 + x3 + x4, -x1 - x2 + x3 + x4,
            -x1 + x2 - x3 + x4, x1 - x2 - x3 + x4)


if __name__ == "__main__":
    dwt_jit = jax.jit(dwt)
    key = jax.random.PRNGKey(0)
    test_shapes = [
        (2, 4, 16, 64),   # fused single-pass path, grid of 2 blocks
        (2, 4, 16, 16),   # small-W fallback path
        (2, 5, 16, 64),   # fused path with ragged last grid block (80 pairs)
    ]
    for i, shape in enumerate(test_shapes):
        x = jax.random.normal(jax.random.fold_in(key, i), shape,
                              dtype=jnp.float32)
        outs = jax.block_until_ready(dwt_jit(x))
        refs = dwt_ref(x)
        for o, r in zip(outs, refs):
            assert o.shape == r.shape and o.dtype == r.dtype
            assert jnp.allclose(o, r, atol=1e-5, rtol=1e-5)
    print("KERNEL_OK")
</pallas_src>

<mosaic_0001>
module attributes {stable_mosaic.version = 11 : i64} {
  func.func @_dwt_fused_kernel(%arg0: i32, %arg1: memref<32x128xf32, #tpu.memory_space<vmem>>, %arg2: memref<32x32xf32, #tpu.memory_space<vmem>>, %arg3: memref<32x32xf32, #tpu.memory_space<vmem>>, %arg4: memref<32x32xf32, #tpu.memory_space<vmem>>, %arg5: memref<32x32xf32, #tpu.memory_space<vmem>>) attributes {dimension_semantics = [#tpu.dimension_semantics<parallel>], iteration_bounds = array<i64: 2>, scalar_prefetch = 0 : i64, scratch_operands = 0 : i64, tpu.core_type = #tpu.core_type<tc>, window_params = [{transform_indices = @transform_0, window_bounds = array<i64: 32, 128>}, {transform_indices = @transform_1, window_bounds = array<i64: 32, 32>}, {transform_indices = @transform_2, window_bounds = array<i64: 32, 32>}, {transform_indices = @transform_3, window_bounds = array<i64: 32, 32>}, {transform_indices = @transform_4, window_bounds = array<i64: 32, 32>}]} {
    %c0 = arith.constant 0 : index
    %c0_0 = arith.constant 0 : index
    %0 = vector.load %arg1[%c0, %c0_0] : memref<32x128xf32, #tpu.memory_space<vmem>>, vector<32x128xf32>
    %1 = tpu.iota {dimensions = array<i32: 1>} : vector<32x128xi32>
    %c1_i32 = arith.constant 1 : i32
    %2 = vector.broadcast %c1_i32 : i32 to vector<32x128xi32>
    %3 = arith.andi %1, %2 : vector<32x128xi32>
    %c0_i32 = arith.constant 0 : i32
    %4 = vector.broadcast %c0_i32 : i32 to vector<32x128xi32>
    %5 = arith.cmpi ne, %3, %4 : vector<32x128xi32>
    %6 = vector.extract_strided_slice %0 {offsets = [0, 1], sizes = [32, 127], strides = [1, 1]} : vector<32x128xf32> to vector<32x127xf32>
    %7 = vector.extract_strided_slice %0 {offsets = [0, 0], sizes = [32, 1], strides = [1, 1]} : vector<32x128xf32> to vector<32x1xf32>
    %8 = tpu.concatenate %6, %7 in 1 : vector<32x127xf32>, vector<32x1xf32> -> vector<32x128xf32>
    %9 = arith.select %5, %8, %0 : vector<32x128xi1>, vector<32x128xf32>
    %c2_i32 = arith.constant 2 : i32
    %10 = vector.broadcast %c2_i32 : i32 to vector<32x128xi32>
    %11 = arith.andi %1, %10 : vector<32x128xi32>
    %c0_i32_1 = arith.constant 0 : i32
    %12 = vector.broadcast %c0_i32_1 : i32 to vector<32x128xi32>
    %13 = arith.cmpi ne, %11, %12 : vector<32x128xi32>
    %14 = vector.extract_strided_slice %9 {offsets = [0, 2], sizes = [32, 126], strides = [1, 1]} : vector<32x128xf32> to vector<32x126xf32>
    %15 = vector.extract_strided_slice %9 {offsets = [0, 0], sizes = [32, 2], strides = [1, 1]} : vector<32x128xf32> to vector<32x2xf32>
    %16 = tpu.concatenate %14, %15 in 1 : vector<32x126xf32>, vector<32x2xf32> -> vector<32x128xf32>
    %17 = arith.select %13, %16, %9 : vector<32x128xi1>, vector<32x128xf32>
    %c4_i32 = arith.constant 4 : i32
    %18 = vector.broadcast %c4_i32 : i32 to vector<32x128xi32>
    %19 = arith.andi %1, %18 : vector<32x128xi32>
    %c0_i32_2 = arith.constant 0 : i32
    %20 = vector.broadcast %c0_i32_2 : i32 to vector<32x128xi32>
    %21 = arith.cmpi ne, %19, %20 : vector<32x128xi32>
    %22 = vector.extract_strided_slice %17 {offsets = [0, 4], sizes = [32, 124], strides = [1, 1]} : vector<32x128xf32> to vector<32x124xf32>
    %23 = vector.extract_strided_slice %17 {offsets = [0, 0], sizes = [32, 4], strides = [1, 1]} : vector<32x128xf32> to vector<32x4xf32>
    %24 = tpu.concatenate %22, %23 in 1 : vector<32x124xf32>, vector<32x4xf32> -> vector<32x128xf32>
    %25 = arith.select %21, %24, %17 : vector<32x128xi1>, vector<32x128xf32>
    %c8_i32 = arith.constant 8 : i32
    %26 = vector.broadcast %c8_i32 : i32 to vector<32x128xi32>
    %27 = arith.andi %1, %26 : vector<32x128xi32>
    %c0_i32_3 = arith.constant 0 : i32
    %28 = vector.broadcast %c0_i32_3 : i32 to vector<32x128xi32>
    %29 = arith.cmpi ne, %27, %28 : vector<32x128xi32>
    %30 = vector.extract_strided_slice %25 {offsets = [0, 8], sizes = [32, 120], strides = [1, 1]} : vector<32x128xf32> to vector<32x120xf32>
    %31 = vector.extract_strided_slice %25 {offsets = [0, 0], sizes = [32, 8], strides = [1, 1]} : vector<32x128xf32> to vector<32x8xf32>
    %32 = tpu.concatenate %30, %31 in 1 : vector<32x120xf32>, vector<32x8xf32> -> vector<32x128xf32>
    %33 = arith.select %29, %32, %25 : vector<32x128xi1>, vector<32x128xf32>
    %c16_i32 = arith.constant 16 : i32
    %34 = vector.broadcast %c16_i32 : i32 to vector<32x128xi32>
    %35 = arith.andi %1, %34 : vector<32x128xi32>
    %c0_i32_4 = arith.constant 0 : i32
    %36 = vector.broadcast %c0_i32_4 : i32 to vector<32x128xi32>
    %37 = arith.cmpi ne, %35, %36 : vector<32x128xi32>
    %38 = vector.extract_strided_slice %33 {offsets = [0, 16], sizes = [32, 112], strides = [1, 1]} : vector<32x128xf32> to vector<32x112xf32>
    %39 = vector.extract_strided_slice %33 {offsets = [0, 0], sizes = [32, 16], strides = [1, 1]} : vector<32x128xf32> to vector<32x16xf32>
    %40 = tpu.concatenate %38, %39 in 1 : vector<32x112xf32>, vector<32x16xf32> -> vector<32x128xf32>
    %41 = arith.select %37, %40, %33 : vector<32x128xi1>, vector<32x128xf32>
    %c32_i32 = arith.constant 32 : i32
    %42 = vector.broadcast %c32_i32 : i32 to vector<32x128xi32>
    %43 = arith.andi %1, %42 : vector<32x128xi32>
    %c0_i32_5 = arith.constant 0 : i32
    %44 = vector.broadcast %c0_i32_5 : i32 to vector<32x128xi32>
    %45 = arith.cmpi ne, %43, %44 : vector<32x128xi32>
    %46 = vector.extract_strided_slice %41 {offsets = [0, 32], sizes = [32, 96], strides = [1, 1]} : vector<32x128xf32> to vector<32x96xf32>
    %47 = vector.extract_strided_slice %41 {offsets = [0, 0], sizes = [32, 32], strides = [1, 1]} : vector<32x128xf32> to vector<32x32xf32>
    %48 = tpu.concatenate %46, %47 in 1 : vector<32x96xf32>, vector<32x32xf32> -> vector<32x128xf32>
    %49 = arith.select %45, %48, %41 : vector<32x128xi1>, vector<32x128xf32>
    %50 = vector.extract_strided_slice %0 {offsets = [0, 1], sizes = [32, 127], strides = [1, 1]} : vector<32x128xf32> to vector<32x127xf32>
    %51 = vector.extract_strided_slice %0 {offsets = [0, 0], sizes = [32, 1], strides = [1, 1]} : vector<32x128xf32> to vector<32x1xf32>
    %52 = tpu.concatenate %50, %51 in 1 : vector<32x127xf32>, vector<32x1xf32> -> vector<32x128xf32>
    %53 = tpu.iota {dimensions = array<i32: 1>} : vector<32x128xi32>
    %c1_i32_6 = arith.constant 1 : i32
    %54 = vector.broadcast %c1_i32_6 : i32 to vector<32x128xi32>
    %55 = arith.andi %53, %54 : vector<32x128xi32>
    %c0_i32_7 = arith.constant 0 : i32
    %56 = vector.broadcast %c0_i32_7 : i32 to vector<32x128xi32>
    %57 = arith.cmpi ne, %55, %56 : vector<32x128xi32>
    %58 = vector.extract_strided_slice %52 {offsets = [0, 1], sizes = [32, 127], strides = [1, 1]} : vector<32x128xf32> to vector<32x127xf32>
    %59 = vector.extract_strided_slice %52 {offsets = [0, 0], sizes = [32, 1], strides = [1, 1]} : vector<32x128xf32> to vector<32x1xf32>
    %60 = tpu.concatenate %58, %59 in 1 : vector<32x127xf32>, vector<32x1xf32> -> vector<32x128xf32>
    %61 = arith.select %57, %60, %52 : vector<32x128xi1>, vector<32x128xf32>
    %c2_i32_8 = arith.constant 2 : i32
    %62 = vector.broadcast %c2_i32_8 : i32 to vector<32x128xi32>
    %63 = arith.andi %53, %62 : vector<32x128xi32>
    %c0_i32_9 = arith.constant 0 : i32
    %64 = vector.broadcast %c0_i32_9 : i32 to vector<32x128xi32>
    %65 = arith.cmpi ne, %63, %64 : vector<32x128xi32>
    %66 = vector.extract_strided_slice %61 {offsets = [0, 2], sizes = [32, 126], strides = [1, 1]} : vector<32x128xf32> to vector<32x126xf32>
    %67 = vector.extract_strided_slice %61 {offsets = [0, 0], sizes = [32, 2], strides = [1, 1]} : vector<32x128xf32> to vector<32x2xf32>
    %68 = tpu.concatenate %66, %67 in 1 : vector<32x126xf32>, vector<32x2xf32> -> vector<32x128xf32>
    %69 = arith.select %65, %68, %61 : vector<32x128xi1>, vector<32x128xf32>
    %c4_i32_10 = arith.constant 4 : i32
    %70 = vector.broadcast %c4_i32_10 : i32 to vector<32x128xi32>
    %71 = arith.andi %53, %70 : vector<32x128xi32>
    %c0_i32_11 = arith.constant 0 : i32
    %72 = vector.broadcast %c0_i32_11 : i32 to vector<32x128xi32>
    %73 = arith.cmpi ne, %71, %72 : vector<32x128xi32>
    %74 = vector.extract_strided_slice %69 {offsets = [0, 4], sizes = [32, 124], strides = [1, 1]} : vector<32x128xf32> to vector<32x124xf32>
    %75 = vector.extract_strided_slice %69 {offsets = [0, 0], sizes = [32, 4], strides = [1, 1]} : vector<32x128xf32> to vector<32x4xf32>
    %76 = tpu.concatenate %74, %75 in 1 : vector<32x124xf32>, vector<32x4xf32> -> vector<32x128xf32>
    %77 = arith.select %73, %76, %69 : vector<32x128xi1>, vector<32x128xf32>
    %c8_i32_12 = arith.constant 8 : i32
    %78 = vector.broadcast %c8_i32_12 : i32 to vector<32x128xi32>
    %79 = arith.andi %53, %78 : vector<32x128xi32>
    %c0_i32_13 = arith.constant 0 : i32
    %80 = vector.broadcast %c0_i32_13 : i32 to vector<32x128xi32>
    %81 = arith.cmpi ne, %79, %80 : vector<32x128xi32>
    %82 = vector.extract_strided_slice %77 {offsets = [0, 8], sizes = [32, 120], strides = [1, 1]} : vector<32x128xf32> to vector<32x120xf32>
    %83 = vector.extract_strided_slice %77 {offsets = [0, 0], sizes = [32, 8], strides = [1, 1]} : vector<32x128xf32> to vector<32x8xf32>
    %84 = tpu.concatenate %82, %83 in 1 : vector<32x120xf32>, vector<32x8xf32> -> vector<32x128xf32>
    %85 = arith.select %81, %84, %77 : vector<32x128xi1>, vector<32x128xf32>
    %c16_i32_14 = arith.constant 16 : i32
    %86 = vector.broadcast %c16_i32_14 : i32 to vector<32x128xi32>
    %87 = arith.andi %53, %86 : vector<32x128xi32>
    %c0_i32_15 = arith.constant 0 : i32
    %88 = vector.broadcast %c0_i32_15 : i32 to vector<32x128xi32>
    %89 = arith.cmpi ne, %87, %88 : vector<32x128xi32>
    %90 = vector.extract_strided_slice %85 {offsets = [0, 16], sizes = [32, 112], strides = [1, 1]} : vector<32x128xf32> to vector<32x112xf32>
    %91 = vector.extract_strided_slice %85 {offsets = [0, 0], sizes = [32, 16], strides = [1, 1]} : vector<32x128xf32> to vector<32x16xf32>
    %92 = tpu.concatenate %90, %91 in 1 : vector<32x112xf32>, vector<32x16xf32> -> vector<32x128xf32>
    %93 = arith.select %89, %92, %85 : vector<32x128xi1>, vector<32x128xf32>
    %c32_i32_16 = arith.constant 32 : i32
    %94 = vector.broadcast %c32_i32_16 : i32 to vector<32x128xi32>
    %95 = arith.andi %53, %94 : vector<32x128xi32>
    %c0_i32_17 = arith.constant 0 : i32
    %96 = vector.broadcast %c0_i32_17 : i32 to vector<32x128xi32>
    %97 = arith.cmpi ne, %95, %96 : vector<32x128xi32>
    %98 = vector.extract_strided_slice %93 {offsets = [0, 32], sizes = [32, 96], strides = [1, 1]} : vector<32x128xf32> to vector<32x96xf32>
    %99 = vector.extract_strided_slice %93 {offsets = [0, 0], sizes = [32, 32], strides = [1, 1]} : vector<32x128xf32> to vector<32x32xf32>
    %100 = tpu.concatenate %98, %99 in 1 : vector<32x96xf32>, vector<32x32xf32> -> vector<32x128xf32>
    %101 = arith.select %97, %100, %93 : vector<32x128xi1>, vector<32x128xf32>
    %102 = vector.extract_strided_slice %49 {offsets = [0, 0], sizes = [32, 32], strides = [1, 1]} : vector<32x128xf32> to vector<32x32xf32>
    %103 = vector.extract_strided_slice %49 {offsets = [0, 32], sizes = [32, 32], strides = [1, 1]} : vector<32x128xf32> to vector<32x32xf32>
    %104 = vector.extract_strided_slice %101 {offsets = [0, 0], sizes = [32, 32], strides = [1, 1]} : vector<32x128xf32> to vector<32x32xf32>
    %105 = vector.extract_strided_slice %101 {offsets = [0, 32], sizes = [32, 32], strides = [1, 1]} : vector<32x128xf32> to vector<32x32xf32>
    %106 = arith.addf %102, %103 : vector<32x32xf32>
    %107 = arith.addf %104, %105 : vector<32x32xf32>
    %108 = arith.subf %103, %102 : vector<32x32xf32>
    %109 = arith.subf %105, %104 : vector<32x32xf32>
    %110 = arith.addf %106, %107 : vector<32x32xf32>
    %cst = arith.constant 5.000000e-01 : f32
    %111 = vector.broadcast %cst : f32 to vector<32x32xf32>
    %112 = arith.mulf %111, %110 : vector<32x32xf32>
    %c0_18 = arith.constant 0 : index
    %c0_19 = arith.constant 0 : index
    %113 = vector.load %arg2[%c0_18, %c0_19] : memref<32x32xf32, #tpu.memory_space<vmem>>, vector<32x32xf32>
    tpu.vector_store %arg2[%c0_18, %c0_19], %112 {strides = array<i32>} : memref<32x32xf32, #tpu.memory_space<vmem>>, vector<32x32xf32>,
    %114 = arith.subf %107, %106 : vector<32x32xf32>
    %cst_20 = arith.constant 5.000000e-01 : f32
    %115 = vector.broadcast %cst_20 : f32 to vector<32x32xf32>
    %116 = arith.mulf %115, %114 : vector<32x32xf32>
    %c0_21 = arith.constant 0 : index
    %c0_22 = arith.constant 0 : index
    %117 = vector.load %arg3[%c0_21, %c0_22] : memref<32x32xf32, #tpu.memory_space<vmem>>, vector<32x32xf32>
    tpu.vector_store %arg3[%c0_21, %c0_22], %116 {strides = array<i32>} : memref<32x32xf32, #tpu.memory_space<vmem>>, vector<32x32xf32>,
    %118 = arith.addf %108, %109 : vector<32x32xf32>
    %cst_23 = arith.constant 5.000000e-01 : f32
    %119 = vector.broadcast %cst_23 : f32 to vector<32x32xf32>
    %120 = arith.mulf %119, %118 : vector<32x32xf32>
    %c0_24 = arith.constant 0 : index
    %c0_25 = arith.constant 0 : index
    %121 = vector.load %arg4[%c0_24, %c0_25] : memref<32x32xf32, #tpu.memory_space<vmem>>, vector<32x32xf32>
    tpu.vector_store %arg4[%c0_24, %c0_25], %120 {strides = array<i32>} : memref<32x32xf32, #tpu.memory_space<vmem>>, vector<32x32xf32>,
    %122 = arith.subf %109, %108 : vector<32x32xf32>
    %cst_26 = arith.constant 5.000000e-01 : f32
    %123 = vector.broadcast %cst_26 : f32 to vector<32x32xf32>
    %124 = arith.mulf %123, %122 : vector<32x32xf32>
    %c0_27 = arith.constant 0 : index
    %c0_28 = arith.constant 0 : index
    %125 = vector.load %arg5[%c0_27, %c0_28] : memref<32x32xf32, #tpu.memory_space<vmem>>, vector<32x32xf32>
    tpu.vector_store %arg5[%c0_27, %c0_28], %124 {strides = array<i32>} : memref<32x32xf32, #tpu.memory_space<vmem>>, vector<32x32xf32>,
    return
  }
  func.func @transform_0(%arg0: i32) -> (i32, i32) {
    %c0_i32 = arith.constant 0 : i32
    %c0_i32_0 = arith.constant 0 : i32
    return %arg0, %c0_i32 : i32, i32
  }
  func.func @transform_1(%arg0: i32) -> (i32, i32) {
    %c0_i32 = arith.constant 0 : i32
    %c0_i32_0 = arith.constant 0 : i32
    return %arg0, %c0_i32 : i32, i32
  }
  func.func @transform_2(%arg0: i32) -> (i32, i32) {
    %c0_i32 = arith.constant 0 : i32
    %c0_i32_0 = arith.constant 0 : i32
    return %arg0, %c0_i32 : i32, i32
  }
  func.func @transform_3(%arg0: i32) -> (i32, i32) {
    %c0_i32 = arith.constant 0 : i32
    %c0_i32_0 = arith.constant 0 : i32
    return %arg0, %c0_i32 : i32, i32
  }
  func.func @transform_4(%arg0: i32) -> (i32, i32) {
    %c0_i32 = arith.constant 0 : i32
    %c0_i32_0 = arith.constant 0 : i32
    return %arg0, %c0_i32 : i32, i32
  }
}

</mosaic_0001>

<bundles_post_ra>
// kernel: dwt.1
= control target key start
LH: loop header
LB: loop body
LE: loop exit
PB: predicated region body
PF: predicated region fallthrough
CT: control target
= control target key end

     0   :  { %10 = vsyncpa [#allocation3], 0  ;;  %s1614_s0 = inlined_call_operand.vmem [shape: f32[64,128], index: 0, kind: input, shape index: {}]   ;;  %s1615_s1 = inlined_call_operand.hbm [shape: f32[64,32], index: 1, kind: output, shape index: {0}]   ;;  %s1616_s2 = inlined_call_operand.hbm [shape: f32[64,32], index: 2, kind: output, shape index: {1}]   ;;  %s1617_s3 = inlined_call_operand.hbm [shape: f32[64,32], index: 3, kind: output, shape index: {2}]   ;;  %s1618_s4 = inlined_call_operand.hbm [shape: f32[64,32], index: 4, kind: output, shape index: {3}]  }
   0x1   :  { %12 = vsyncpa [#allocation3 + $0x1], 0 }
   0x2   :  { %13 = vsyncpa [#allocation5], 0 }
   0x3   :  { %15 = vsyncpa [#allocation5 + $0x1], 0 }
   0x4   :  { %16 = vsyncpa [#allocation8], 0 }
   0x5   :  { %18 = vsyncpa [#allocation8 + $0x1], 0  ;;  %s1158_s15 = smov 0   ;;  %s1160_s16 = smov 0  }
   0x6   :  { %s1162_s17 = smov 0   ;;  %s1164_s18 = smov 0  }
   0x7 LB: > { %s1179_s19 = sadd.s32 4294967295, %s1118_s18   ;;  %s873_s20 = sadd.s32 4294967294, %s1118_s18   ;;  %s1118_s18 = sphi %s1164_s18, %s1636_s18   ;;  %s1114_s17 = sphi %s1162_s17, %s1635_s17   ;;  %s1110_s16 = sphi %s1160_s16, %s1634_s16   ;;  %s1106_s15 = sphi %s1158_s15, %s1633_s15  }
   0x8   : > { %s1183_s21 = sadd.s32 1, %s1118_s18   ;;  %s57_s22 = sadd.s32 1, %s1114_s17 }
   0x9   : > { %s54_s23 = ssub.s32 %s1118_s18, %s1183_s21  ;;  %p67_p0 = scmp.ne.s32.totalorder %s1114_s17, %s1110_s16 }
   0xa   : > { %p55_p1 = scmp.eq.s32.totalorder %s54_s23, 0  ;;  %p68_p2 = scmp.eq.s32.totalorder %s1179_s19, 1 }
   0xb   : > { %p73_p3 = scmp.ne.s32.totalorder %s1110_s16, %s1106_s15  ;;  %p74_p4 = scmp.eq.s32.totalorder %s873_s20, 1 }
   0xc   : > { %s1196_s24 = scalar_select %p55_p1, %s1114_s17, %s57_s22  }
   0xd   : > { %p1198_p5 = por %p68_p2, %p67_p0  ;;  %p1202_p6 = por %p74_p4, %p73_p3 }
   0xe   : > { %p876_p7 = scmp.ge.s32.totalorder %s1118_s18, 1  ;;  %p179_p8 = scmp.lt.s32.totalorder %s1118_s18, 3 }
  0x10   : > { %p180_p9 = pnand %p876_p7, %p179_p8 }
  0x11   : > { %s881_s27 = sshll.u32 (!%p180_p9), %s1179_s19, 2  ;;  %s1120_s6 = smov (!%p180_p9), 127   ;;  %v234_v4 = vlaneseq (!%p180_p9)  ;;  %vm568_vm6 = vcmask (!%p180_p9), 261120  }
  0x12   : > { %183 = sbr.rel (%p180_p9) target bundleno = 1122 (0x462), region = 24  ;;  %p221_p10 = scmp.lt.s32.totalorder (!%p180_p9), %s881_s27, 7 }
  0x13   : > { %v1212_v5 = vand.u32 (!%p180_p9), 127, %v234_v4  ;;  %s1121_s7 = smov (!%p180_p9), 126   ;;  %s1122_s8 = smov (!%p180_p9), 124  }
  0x14   : > { %s1123_s9 = smov (!%p180_p9), 120   ;;  %s1124_s10 = smov (!%p180_p9), 112  }
  0x15   : > { %v236_v8 = vand.u32 (!%p180_p9), 1, %v1212_v5  ;;  %v258_v18 = vand.u32 (!%p180_p9), 2, %v1212_v5  ;;  %v280_v36 = vand.u32 (!%p180_p9), 4, %v1212_v5  ;;  %v302_v54 = vand.u32 (!%p180_p9), 8, %v1212_v5  ;;  %s1125_s11 = smov (!%p180_p9), 96   ;;  %s1126_s12 = smov (!%p180_p9), 32  }
  0x16   : > { %s1395_s13 = sand.u32 (!%p180_p9), 1, %s1110_s16  }
  0x17   : > { %vm1215_vm0 = vcmp.ne.s32.totalorder (!%p180_p9), %v236_v8, 0  ;;  %vm1234_vm1 = vcmp.ne.s32.totalorder (!%p180_p9), %v258_v18, 0  ;;  %vm1255_vm2 = vcmp.ne.s32.totalorder (!%p180_p9), %v280_v36, 0  ;;  %vm1276_vm3 = vcmp.ne.s32.totalorder (!%p180_p9), %v302_v54, 0  ;;  %s1401_s14 = sshll.u32 (!%p180_p9), %s1395_s13, 5 }
  0x18   : > { %s1410_s22 = scalar_lea.vmem (!%p180_p9), [#allocation2], %s1401_s14  ;;  %s1415_s23 = scalar_lea.vmem (!%p180_p9), [#allocation4], %s1401_s14 }
  0x19   : > { %s1638_s27 = smov (!%p221_p10, %s881_s27), 7  ;;  %s686_s29 = sshll.u32 %s1415_s23, 4  ;;  %s1442_s29 = int_to_ptr.vmem [resolvable:$true] %s686_s29 }
  0x1a   : > { %s882_s28 = sshll.u32 %s1638_s27, 3  ;;  %s646_s27 = sand.u32 1, %s1179_s19  }
  0x1b   : > { %s224_s5 = scalar_lea.vmem %s1614_s0, %s882_s28  ;;  %s1424_s28 = sshll.u32 %s1179_s19, 9 }
  0x1c   : > { %v230_v0 = vld [vmem:[%s224_s5] sm:$0xff]  ;;  %v232_v1 = vld [vmem:[%s224_s5 + $0x10] sm:$0xff]  ;;  %v231_v2 = vld [vmem:[%s224_s5 + $0x8] sm:$0xff]  ;;  %s670_s30 = sshll.u32 %s1410_s22, 4  ;;  %s1440_s19 = scalar_lea.hbm %s1616_s2, %s1424_s28  ;;  %s1450_s30 = int_to_ptr.vmem [resolvable:$true] %s670_s30 }
  0x1d   : > { %242 = vrot.lane.b32.xlu0 %v230_v0, %s1120_s6  ;;  %246 = vrot.lane.b32.xlu1 %v232_v1, %s1120_s6  ;;  %v233_v3 = vld [vmem:[%s224_s5 + $0x18] sm:$0xff] }
  0x21   : > { %244 = vrot.lane.b32.xlu0 %v231_v2, %s1120_s6  ;;  %248 = vrot.lane.b32.xlu1 %v233_v3, %s1120_s6 }
  0x8f   : > { %v243_v6 = vpop.permute.xlu0 %242  ;;  %v247_v7 = vpop.permute.xlu1 %246 }
  0x90   : > { %372 = vrot.lane.b32.xlu0 %v243_v6, %s1120_s6  ;;  %v254_v12 = vsel %vm1215_vm0, %v243_v6, %v230_v0  ;;  %v256_v13 = vsel %vm1215_vm0, %v247_v7, %v232_v1 }
  0x93   : > { %v245_v9 = vpop.permute.xlu0 %244  ;;  %v249_v11 = vpop.permute.xlu1 %248 }
  0x94   : > { %376 = vrot.lane.b32.xlu0 %v247_v7, %s1120_s6  ;;  %374 = vrot.lane.b32.xlu1 %v245_v9, %s1120_s6  ;;  %v255_v14 = vsel %vm1215_vm0, %v245_v9, %v231_v2  ;;  %v257_v15 = vsel %vm1215_vm0, %v249_v11, %v233_v3 }
  0x98   : > { %264 = vrot.lane.b32.xlu0 %v254_v12, %s1121_s7  ;;  %378 = vrot.lane.b32.xlu1 %v249_v11, %s1120_s6 }
  0x9c   : > { %268 = vrot.lane.b32.xlu0 %v256_v13, %s1121_s7  ;;  %266 = vrot.lane.b32.xlu1 %v255_v14, %s1121_s7 }
  0xa0   : > { %270 = vrot.lane.b32.xlu1 %v257_v15, %s1121_s7 }
 0x102   : > { %v373_v16 = vpop.permute.xlu0 %372 }
 0x103   : > { %v384_v17 = vsel %vm1215_vm0, %v373_v16, %v243_v6 }
 0x104   : > { %392 = vrot.lane.b32.xlu0 %v384_v17, %s1121_s7 }
 0x106   : > { %v375_v19 = vpop.permute.xlu1 %374  ;;  %v377_v20 = vpop.permute.xlu0 %376 }
 0x107   : > { %v385_v21 = vsel %vm1215_vm0, %v375_v19, %v245_v9  ;;  %v386_v22 = vsel %vm1215_vm0, %v377_v20, %v247_v7  ;;  %v324_v9 = vand.u32 16, %v1212_v5 }
 0x108   : > { %394 = vrot.lane.b32.xlu1 %v385_v21, %s1121_s7  ;;  %396 = vrot.lane.b32.xlu0 %v386_v22, %s1121_s7 }
 0x109   : > { %vm1297_vm4 = vcmp.ne.s32.totalorder %v324_v9, 0 }
 0x10a   : > { %v379_v24 = vpop.permute.xlu1 %378  ;;  %v265_v25 = vpop.permute.xlu0 %264 }
 0x10b   : > { %v387_v26 = vsel %vm1215_vm0, %v379_v24, %v249_v11  ;;  %v276_v27 = vsel %vm1234_vm1, %v265_v25, %v254_v12 }
 0x10c   : > { %398 = vrot.lane.b32.xlu1 %v387_v26, %s1121_s7  ;;  %286 = vrot.lane.b32.xlu0 %v276_v27, %s1122_s8 }
 0x10e   : > { %v267_v28 = vpop.permute.xlu1 %266  ;;  %v269_v29 = vpop.permute.xlu0 %268 }
 0x10f   : > { %v277_v30 = vsel %vm1234_vm1, %v267_v28, %v255_v14  ;;  %v278_v31 = vsel %vm1234_vm1, %v269_v29, %v256_v13 }
 0x110   : > { %288 = vrot.lane.b32.xlu1 %v277_v30, %s1122_s8  ;;  %290 = vrot.lane.b32.xlu0 %v278_v31, %s1122_s8 }
 0x112   : > { %v271_v32 = vpop.permute.xlu1 %270 }
 0x113   : > { %v279_v33 = vsel %vm1234_vm1, %v271_v32, %v257_v15 }
 0x114   : > { %292 = vrot.lane.b32.xlu1 %v279_v33, %s1122_s8 }
 0x176   : > { %v393_v34 = vpop.permute.xlu0 %392 }
 0x177   : > { %v404_v35 = vsel %vm1234_vm1, %v393_v34, %v384_v17 }
 0x178   : > { %412 = vrot.lane.b32.xlu0 %v404_v35, %s1122_s8 }
 0x17a   : > { %v395_v37 = vpop.permute.xlu1 %394  ;;  %v397_v38 = vpop.permute.xlu0 %396 }
 0x17b   : > { %v405_v39 = vsel %vm1234_vm1, %v395_v37, %v385_v21  ;;  %v406_v40 = vsel %vm1234_vm1, %v397_v38, %v386_v22 }
 0x17c   : > { %414 = vrot.lane.b32.xlu1 %v405_v39, %s1122_s8  ;;  %416 = vrot.lane.b32.xlu0 %v406_v40, %s1122_s8 }
 0x17e   : > { %v399_v42 = vpop.permute.xlu1 %398  ;;  %v287_v43 = vpop.permute.xlu0 %286 }
 0x17f   : > { %v407_v44 = vsel %vm1234_vm1, %v399_v42, %v387_v26  ;;  %v298_v45 = vsel %vm1255_vm2, %v287_v43, %v276_v27  ;;  %v346_v27 = vand.u32 32, %v1212_v5 }
 0x180   : > { %418 = vrot.lane.b32.xlu1 %v407_v44, %s1122_s8  ;;  %308 = vrot.lane.b32.xlu0 %v298_v45, %s1123_s9 }
 0x181   : > { %vm1325_vm5 = vcmp.ne.s32.totalorder %v346_v27, 0 }
 0x182   : > { %v289_v46 = vpop.permute.xlu1 %288  ;;  %v291_v47 = vpop.permute.xlu0 %290 }
 0x183   : > { %v299_v48 = vsel %vm1255_vm2, %v289_v46, %v277_v30  ;;  %v300_v49 = vsel %vm1255_vm2, %v291_v47, %v278_v31 }
 0x184   : > { %310 = vrot.lane.b32.xlu1 %v299_v48, %s1123_s9  ;;  %312 = vrot.lane.b32.xlu0 %v300_v49, %s1123_s9 }
 0x186   : > { %v293_v50 = vpop.permute.xlu1 %292 }
 0x187   : > { %v301_v51 = vsel %vm1255_vm2, %v293_v50, %v279_v33 }
 0x188   : > { %314 = vrot.lane.b32.xlu1 %v301_v51, %s1123_s9 }
 0x1ea   : > { %v413_v52 = vpop.permute.xlu0 %412 }
 0x1eb   : > { %v424_v53 = vsel %vm1255_vm2, %v413_v52, %v404_v35 }
 0x1ec   : > { %432 = vrot.lane.b32.xlu0 %v424_v53, %s1123_s9 }
 0x1ee   : > { %v415_v55 = vpop.permute.xlu1 %414  ;;  %v417_v56 = vpop.permute.xlu0 %416 }
 0x1ef   : > { %v425_v57 = vsel %vm1255_vm2, %v415_v55, %v405_v39  ;;  %v426_v58 = vsel %vm1255_vm2, %v417_v56, %v406_v40 }
 0x1f0   : > { %434 = vrot.lane.b32.xlu1 %v425_v57, %s1123_s9  ;;  %436 = vrot.lane.b32.xlu0 %v426_v58, %s1123_s9 }
 0x1f2   : > { %v419_v60 = vpop.permute.xlu1 %418  ;;  %v309_v61 = vpop.permute.xlu0 %308 }
 0x1f3   : > { %v427_v62 = vsel %vm1255_vm2, %v419_v60, %v407_v44  ;;  %v320_v63 = vsel %vm1276_vm3, %v309_v61, %v298_v45 }
 0x1f4   : > { %438 = vrot.lane.b32.xlu1 %v427_v62, %s1123_s9  ;;  %330 = vrot.lane.b32.xlu0 %v320_v63, %s1124_s10  ;;  %s1448_s9 = scalar_lea.hbm %s1615_s1, %s1424_s28 }
 0x1f6   : > { %v311_v0 = vpop.permute.xlu1 %310  ;;  %v313_v1 = vpop.permute.xlu0 %312 }
 0x1f7   : > { %v321_v2 = vsel %vm1276_vm3, %v311_v0, %v299_v48  ;;  %v322_v3 = vsel %vm1276_vm3, %v313_v1, %v300_v49 }
 0x1f8   : > { %332 = vrot.lane.b32.xlu1 %v321_v2, %s1124_s10  ;;  %334 = vrot.lane.b32.xlu0 %v322_v3, %s1124_s10 }
 0x1fa   : > { %v315_v4 = vpop.permute.xlu1 %314 }
 0x1fb   : > { %v323_v6 = vsel %vm1276_vm3, %v315_v4, %v301_v51 }
 0x1fc   : > { %336 = vrot.lane.b32.xlu1 %v323_v6, %s1124_s10 }
 0x25e   : > { %v433_v7 = vpop.permute.xlu0 %432 }
 0x25f   : > { %v444_v8 = vsel %vm1276_vm3, %v433_v7, %v424_v53 }
 0x260   : > { %452 = vrot.lane.b32.xlu0 %v444_v8, %s1124_s10 }
 0x262   : > { %v435_v10 = vpop.permute.xlu1 %434  ;;  %v437_v11 = vpop.permute.xlu0 %436 }
 0x263   : > { %v445_v12 = vsel %vm1276_vm3, %v435_v10, %v425_v57  ;;  %v446_v13 = vsel %vm1276_vm3, %v437_v11, %v426_v58 }
 0x264   : > { %454 = vrot.lane.b32.xlu1 %v445_v12, %s1124_s10  ;;  %456 = vrot.lane.b32.xlu0 %v446_v13, %s1124_s10 }
 0x266   : > { %v439_v15 = vpop.permute.xlu1 %438  ;;  %v331_v16 = vpop.permute.xlu0 %330 }
 0x267   : > { %v447_v17 = vsel %vm1276_vm3, %v439_v15, %v427_v62  ;;  %v342_v18 = vsel %vm1297_vm4, %v331_v16, %v320_v63 }
 0x268   : > { %458 = vrot.lane.b32.xlu1 %v447_v17, %s1124_s10  ;;  %352 = vrot.lane.b32.xlu0 %v342_v18, %s1125_s11  ;;  %s1456_s10 = scalar_lea.sflag [#allocation5], %s646_s27 }
 0x26a   : > { %v333_v19 = vpop.permute.xlu1 %332  ;;  %v335_v20 = vpop.permute.xlu0 %334 }
 0x26b   : > { %v343_v21 = vsel %vm1297_vm4, %v333_v19, %v321_v2  ;;  %v344_v22 = vsel %vm1297_vm4, %v335_v20, %v322_v3 }
 0x26c   : > { %354 = vrot.lane.b32.xlu1 %v343_v21, %s1125_s11  ;;  %356 = vrot.lane.b32.xlu0 %v344_v22, %s1125_s11 }
 0x26e   : > { %v337_v23 = vpop.permute.xlu1 %336 }
 0x26f   : > { %v345_v24 = vsel %vm1297_vm4, %v337_v23, %v323_v6 }
 0x270   : > { %358 = vrot.lane.b32.xlu1 %v345_v24, %s1125_s11 }
 0x2d2   : > { %v453_v25 = vpop.permute.xlu0 %452 }
 0x2d3   : > { %v464_v26 = vsel %vm1297_vm4, %v453_v25, %v444_v8 }
 0x2d4   : > { %472 = vrot.lane.b32.xlu0 %v464_v26, %s1125_s11 }
 0x2d6   : > { %v455_v28 = vpop.permute.xlu1 %454  ;;  %v457_v29 = vpop.permute.xlu0 %456 }
 0x2d7   : > { %v465_v30 = vsel %vm1297_vm4, %v455_v28, %v445_v12  ;;  %v466_v31 = vsel %vm1297_vm4, %v457_v29, %v446_v13 }
 0x2d8   : > { %474 = vrot.lane.b32.xlu1 %v465_v30, %s1125_s11  ;;  %476 = vrot.lane.b32.xlu0 %v466_v31, %s1125_s11 }
 0x2da   : > { %v459_v33 = vpop.permute.xlu1 %458  ;;  %v353_v34 = vpop.permute.xlu0 %352 }
 0x2db   : > { %v1331_v5 = vsel %vm1325_vm5, %v353_v34, %v342_v18  ;;  %v467_v35 = vsel %vm1297_vm4, %v459_v33, %v447_v17 }
 0x2dc   : > { %478 = vrot.lane.b32.xlu1 %v467_v35, %s1125_s11  ;;  %528 = vrot.lane.b32.xlu0 %v1331_v5, %s1126_s12 }
 0x2de   : > { %v355_v36 = vpop.permute.xlu1 %354  ;;  %v357_v37 = vpop.permute.xlu0 %356 }
 0x2df   : > { %v1339_v38 = vsel %vm1325_vm5, %v355_v36, %v343_v21  ;;  %v1343_v39 = vsel %vm1325_vm5, %v357_v37, %v344_v22 }
 0x2e0   : > { %530 = vrot.lane.b32.xlu1 %v1339_v38, %s1126_s12  ;;  %532 = vrot.lane.b32.xlu0 %v1343_v39, %s1126_s12 }
 0x2e2   : > { %v359_v40 = vpop.permute.xlu1 %358 }
 0x2e3   : > { %v1349_v41 = vsel %vm1325_vm5, %v359_v40, %v345_v24 }
 0x2e4   : > { %534 = vrot.lane.b32.xlu1 %v1349_v41, %s1126_s12 }
 0x346   : > { %v473_v42 = vpop.permute.xlu0 %472 }
 0x347   : > { %v484_v43 = vsel %vm1325_vm5, %v473_v42, %v464_v26 }
 0x348   : > { %544 = vrot.lane.b32.xlu0 %v484_v43, %s1126_s12 }
 0x34a   : > { %v475_v44 = vpop.permute.xlu1 %474  ;;  %v477_v45 = vpop.permute.xlu0 %476 }
 0x34b   : > { %v1356_v46 = vsel %vm1325_vm5, %v475_v44, %v465_v30  ;;  %v1360_v47 = vsel %vm1325_vm5, %v477_v45, %v466_v31 }
 0x34c   : > { %546 = vrot.lane.b32.xlu1 %v1356_v46, %s1126_s12  ;;  %548 = vrot.lane.b32.xlu0 %v1360_v47, %s1126_s12 }
 0x34e   : > { %v479_v48 = vpop.permute.xlu1 %478  ;;  %v529_v50 = vpop.permute.xlu0 %528 }
 0x34f   : > { %v1366_v49 = vsel %vm1325_vm5, %v479_v48, %v467_v35  ;;  %v540_v55 = vsub.f32 %v1331_v5, %v529_v50 }
 0x350   : > { %550 = vrot.lane.b32.xlu1 %v1366_v49, %s1126_s12  ;;  %492 = vrot.lane.b32.xlu0 %v1331_v5, %s1125_s11  ;;  %s1127_s12 = smov [#allocation4]  }
 0x351   : > { %s968_s5 = sshll.u32 %s1127_s12, 4  ;;  %s969_s5 = int_to_ptr.vmem [resolvable:$false] %s968_s5 }
 0x352   : > { %v531_v51 = vpop.permute.xlu1 %530  ;;  %v533_v52 = vpop.permute.xlu0 %532  ;;  %s970_s6 = scalar_lea.vmem %s969_s5, 1024  ;;  %p971_p0 = scmp.lt.s32.totalorder %s1442_s29, %s969_s5 }
 0x353   : > { %v541_v58 = vsub.f32 %v1339_v38, %v531_v51  ;;  %v542_v61 = vsub.f32 %v1343_v39, %v533_v52 }
 0x354   : > { %494 = vrot.lane.b32.xlu1 %v1339_v38, %s1125_s11  ;;  %496 = vrot.lane.b32.xlu0 %v1343_v39, %s1125_s11 }
 0x356   : > { %v535_v53 = vpop.permute.xlu1 %534 }
 0x357   : > { %v543_v9 = vsub.f32 %v1349_v41, %v535_v53 }
 0x358   : > { %498 = vrot.lane.b32.xlu1 %v1349_v41, %s1125_s11  ;;  %512 = vrot.lane.b32.xlu0 %v484_v43, %s1125_s11 }
 0x35c   : > { %514 = vrot.lane.b32.xlu1 %v1356_v46, %s1125_s11  ;;  %516 = vrot.lane.b32.xlu0 %v1360_v47, %s1125_s11 }
 0x360   : > { %518 = vrot.lane.b32.xlu1 %v1366_v49, %s1125_s11 }
 0x3ba   : > { %v545_v54 = vpop.permute.xlu0 %544 }
 0x3bb   : > { %v556_v56 = vsub.f32 %v484_v43, %v545_v54 }
 0x3bd   : > { %v585_v57 = vadd.f32 %v556_v56, %v540_v55  ;;  %v613_v6 = vsub.f32 %v556_v56, %v540_v55 }
 0x3be   : > { %v547_v59 = vpop.permute.xlu1 %546  ;;  %v549_v60 = vpop.permute.xlu0 %548 }
 0x3bf   : > { %v589_v62 = vmul.f32 0.5, %v585_v57  ;;  %v557_v63 = vsub.f32 %v1356_v46, %v547_v59  ;;  %v558_v0 = vsub.f32 %v1360_v47, %v549_v60  ;;  %v617_v14 = vmul.f32 0.5, %v613_v6 }
 0x3c1   : > { %v586_v1 = vadd.f32 %v557_v63, %v541_v58  ;;  %v587_v2 = vadd.f32 %v558_v0, %v542_v61  ;;  %597 = vrot.lane.b32.xlu0 %v589_v62, %s1125_s11  ;;  %v615_v15 = vsub.f32 %v558_v0, %v542_v61  ;;  %v614_v16 = vsub.f32 %v557_v63, %v541_v58 }
 0x3c2   : > { %v551_v3 = vpop.permute.xlu1 %550  ;;  %v493_v4 = vpop.permute.xlu0 %492 }
 0x3c3   : > { %v590_v7 = vmul.f32 0.5, %v586_v1  ;;  %v591_v8 = vmul.f32 0.5, %v587_v2  ;;  %v559_v10 = vsub.f32 %v1366_v49, %v551_v3  ;;  %v619_v20 = vmul.f32 0.5, %v615_v15 }
 0x3c4   : > { %v504_v21 = vadd.f32 %v493_v4, %v1331_v5  ;;  %v618_v23 = vmul.f32 0.5, %v614_v16 }
 0x3c5   : > { %599 = vrot.lane.b32.xlu1 %v590_v7, %s1125_s11  ;;  %601 = vrot.lane.b32.xlu0 %v591_v8, %s1125_s11  ;;  %v588_v11 = vadd.f32 %v559_v10, %v543_v9  ;;  %v616_v24 = vsub.f32 %v559_v10, %v543_v9 }
 0x3c6   : > { %v495_v12 = vpop.permute.xlu1 %494  ;;  %v497_v13 = vpop.permute.xlu0 %496 }
 0x3c7   : > { %v592_v17 = vmul.f32 0.5, %v588_v11  ;;  %v505_v27 = vadd.f32 %v495_v12, %v1339_v38  ;;  %v506_v28 = vadd.f32 %v497_v13, %v1343_v39  ;;  %v620_v5 = vmul.f32 0.5, %v616_v24 }
 0x3c9   : > { %625 = vrot.lane.b32.xlu0 %v617_v14, %s1125_s11  ;;  %603 = vrot.lane.b32.xlu1 %v592_v17, %s1125_s11 }
 0x3ca   : > { %v499_v18 = vpop.permute.xlu1 %498  ;;  %v513_v19 = vpop.permute.xlu0 %512 }
 0x3cb   : > { %v524_v22 = vadd.f32 %v513_v19, %v484_v43  ;;  %v507_v45 = vadd.f32 %v499_v18, %v1349_v41 }
 0x3cd   : > { %v560_v25 = vadd.f32 %v524_v22, %v504_v21  ;;  %v573_v26 = vsub.f32 %v524_v22, %v504_v21  ;;  %629 = vrot.lane.b32.xlu0 %v619_v20, %s1125_s11  ;;  %627 = vrot.lane.b32.xlu1 %v618_v23, %s1125_s11 }
 0x3ce   : > { %v515_v29 = vpop.permute.xlu1 %514  ;;  %v517_v30 = vpop.permute.xlu0 %516 }
 0x3cf   : > { %v564_v31 = vmul.f32 0.5, %v560_v25  ;;  %v577_v32 = vmul.f32 0.5, %v573_v26  ;;  %v525_v33 = vadd.f32 %v515_v29, %v1356_v46  ;;  %v526_v34 = vadd.f32 %v517_v30, %v1360_v47 }
 0x3d1   : > { %569 = vst.msk [vmem:[%s1410_s22] sm:$0xff] %vm568_vm6, %v564_v31  ;;  %581 = vst.msk [vmem:[%s1415_s23] sm:$0xff] %vm568_vm6, %v577_v32  ;;  %v561_v35 = vadd.f32 %v525_v33, %v505_v27  ;;  %v574_v36 = vsub.f32 %v525_v33, %v505_v27  ;;  %v562_v37 = vadd.f32 %v526_v34, %v506_v28  ;;  %631 = vrot.lane.b32.xlu1 %v620_v5, %s1125_s11  ;;  %s964_s11 = scalar_lea.vmem %s1442_s29, 512 }
 0x3d2   : > { %v575_v38 = vsub.f32 %v526_v34, %v506_v28  ;;  %v519_v39 = vpop.permute.xlu1 %518  ;;  %p965_p11 = scmp.ne.s32.totalorder %s1442_s29, %s964_s11  ;;  %p972_p1 = scmp.lt.s32.totalorder %s970_s6, %s964_s11 }
 0x3d3   : > { %v565_v40 = vmul.f32 0.5, %v561_v35  ;;  %v578_v42 = vmul.f32 0.5, %v574_v36  ;;  %v566_v43 = vmul.f32 0.5, %v562_v37  ;;  %v527_v46 = vadd.f32 %v519_v39, %v1366_v49 }
 0x3d4   : > { %v579_v44 = vmul.f32 0.5, %v575_v38  ;;  %p966_p12 = pnand %p965_p11, %p1198_p5  ;;  %p973_p2 = por %p972_p1, %p971_p0 }
 0x3d5   : > { %570 = vst.msk [vmem:[%s1410_s22 + $0x8] sm:$0xff] %vm568_vm6, %v565_v40  ;;  %582 = vst.msk [vmem:[%s1415_s23 + $0x8] sm:$0xff] %vm568_vm6, %v578_v42  ;;  %v563_v47 = vadd.f32 %v527_v46, %v507_v45  ;;  %v576_v41 = vsub.f32 %v527_v46, %v507_v45 }
 0x3d6   : > { %571 = vst.msk [vmem:[%s1410_s22 + $0x10] sm:$0xff] %vm568_vm6, %v566_v43  ;;  %583 = vst.msk [vmem:[%s1415_s23 + $0x10] sm:$0xff] %vm568_vm6, %v579_v44  ;;  %p967_p13 = pneg %p966_p12 }
 0x3d7   : > { %v567_v48 = vmul.f32 0.5, %v563_v47  ;;  %v580_v49 = vmul.f32 0.5, %v576_v41 }
 0x3d8   : > { %p974_p3 = pnand %p973_p2, %p967_p13 }
 0x3d9   : > { %572 = vst.msk [vmem:[%s1410_s22 + $0x18] sm:$0xff] %vm568_vm6, %v567_v48  ;;  %584 = vst.msk [vmem:[%s1415_s23 + $0x18] sm:$0xff] %vm568_vm6, %v580_v49 }
 0x3da   : > { %977 = shalt.err (!%p974_p3)
}
 0x3db   : > { %s978_s22 = scalar_lea.hbm %s1440_s19, 512  ;;  %s982_s7 = scalar_lea.hbm %s1616_s2, 1024 }
 0x3dc   : > { %p979_p4 = scmp.ne.s32.totalorder %s1440_s19, %s978_s22  ;;  %p983_p9 = scmp.lt.u32.totalorder %s1440_s19, %s1616_s2 }
 0x3dd   : > { %p984_p10 = scmp.lt.u32.totalorder %s982_s7, %s978_s22  ;;  %p986_p12 = scmp.lt.u32.totalorder %s978_s22, %s1440_s19 }
 0x3de   : > { %p980_p7 = pnand %p979_p4, %p1198_p5 }
 0x3df   : > { %p985_p11 = por %p984_p10, %p983_p9 }
 0x3e0   : > { %p981_p8 = pneg %p980_p7 }
 0x3e1   : > { %p987_p13 = por %p986_p12, %p985_p11 }
 0x3e3   : > { %p988_p0 = pnand %p987_p13, %p981_p8 }
 0x3e5   : > { %991 = shalt.err (!%p988_p0)
}
 0x3e6   : > { %s1128_s11 = smov 128   ;;  %s1129_s5 = smov 8  }
 0x3e7   : > { %902 = dma.vmem_to_hbm [thread:$0]  (%p1198_p5), %s1442_s29, 512, %s1440_s19, %s1456_s10, %s1128_s11, %s1128_s11, %s1129_s5  }
 0x3e8   : > { %s642_s6 = scalar_lea.sflag [#allocation3], %s1395_s13  ;;  %s992_s22 = scalar_lea.vmem %s1450_s30, 512 }
 0x3e9   : > { %p993_p1 = scmp.ne.s32.totalorder %s1450_s30, %s992_s22  ;;  %s1130_s23 = smov [#allocation2]  }
 0x3ea   : > { %s996_s27 = sshll.u32 %s1130_s23, 4  ;;  %s997_s27 = int_to_ptr.vmem [resolvable:$false] %s996_s27 }
 0x3eb   : > { %p994_p2 = pnand %p993_p1, %p1198_p5  ;;  %s998_s7 = scalar_lea.vmem %s997_s27, 1024 }
 0x3ec   : > { %p999_p4 = scmp.lt.s32.totalorder %s1450_s30, %s997_s27  ;;  %p1000_p7 = scmp.lt.s32.totalorder %s998_s7, %s992_s22 }
 0x3ed   : > { %p995_p3 = pneg %p994_p2 }
 0x3ee   : > { %p1001_p8 = por %p1000_p7, %p999_p4 }
 0x3f0   : > { %p1002_p9 = pnand %p1001_p8, %p995_p3 }
 0x3f2   : > { %1005 = shalt.err (!%p1002_p9)
}
 0x3f3   : > { %s1006_s29 = scalar_lea.hbm %s1448_s9, 512  ;;  %s1010_s12 = scalar_lea.hbm %s1615_s1, 1024 }
 0x3f4   : > { %p1007_p10 = scmp.ne.s32.totalorder %s1448_s9, %s1006_s29  ;;  %p1011_p13 = scmp.lt.u32.totalorder %s1448_s9, %s1615_s1 }
 0x3f5   : > { %p1012_p0 = scmp.lt.u32.totalorder %s1010_s12, %s1006_s29  ;;  %p1014_p2 = scmp.lt.u32.totalorder %s1006_s29, %s1448_s9 }
 0x3f6   : > { %p1008_p11 = pnand %p1007_p10, %p1198_p5 }
 0x3f7   : > { %p1013_p1 = por %p1012_p0, %p1011_p13 }
 0x3f8   : > { %p1009_p12 = pneg %p1008_p11 }
 0x3f9   : > { %p1015_p3 = por %p1014_p2, %p1013_p1 }
 0x3fb   : > { %p1016_p4 = pnand %p1015_p3, %p1009_p12 }
 0x3fd   : > { %1019 = shalt.err (!%p1016_p4)
}
 0x3fe   : > { %901 = dma.vmem_to_hbm [thread:$0]  (%p1198_p5), %s1450_s30, 512, %s1448_s9, %s642_s6, %s1128_s11, %s1128_s11, %s1129_s5  }
 0x3ff   : > { %s212_s22 = scalar_lea.vmem [#allocation6], %s1401_s14  ;;  %s1520_s9 = scalar_lea.hbm %s1617_s3, %s1424_s28 }
 0x400   : > { %s702_s7 = sshll.u32 %s212_s22, 4  ;;  %s1523_s6 = scalar_lea.vmem [#allocation7], %s1401_s14  ;;  %s1514_s7 = int_to_ptr.vmem [resolvable:$true] %s702_s7 }
 0x401   : > { %s1020_s19 = scalar_lea.vmem %s1514_s7, 512  ;;  %s1131_s8 = smov [#allocation6]  }
 0x402   : > { %p1021_p7 = scmp.ne.s32.totalorder %s1514_s7, %s1020_s19  ;;  %s1024_s12 = sshll.u32 %s1131_s8, 4  ;;  %s1025_s12 = int_to_ptr.vmem [resolvable:$false] %s1024_s12 }
 0x403   : > { %s1026_s23 = scalar_lea.vmem %s1025_s12, 1024  ;;  %p1027_p10 = scmp.lt.s32.totalorder %s1514_s7, %s1025_s12 }
 0x404   : > { %p1022_p8 = pnand %p1021_p7, %p1198_p5  ;;  %p1028_p11 = scmp.lt.s32.totalorder %s1026_s23, %s1020_s19 }
 0x406   : > { %p1023_p9 = pneg %p1022_p8  ;;  %p1029_p12 = por %p1028_p11, %p1027_p10 }
 0x408   : > { %p1030_p13 = pnand %p1029_p12, %p1023_p9 }
 0x433   : > { %v598_v50 = vpop.permute.xlu0 %597 }
 0x434   : > { %609 = vst.msk [vmem:[%s212_s22] sm:$0xff] %vm568_vm6, %v598_v50 }
 0x437   : > { %v600_v51 = vpop.permute.xlu1 %599  ;;  %v602_v52 = vpop.permute.xlu0 %601 }
 0x438   : > { %610 = vst.msk [vmem:[%s212_s22 + $0x8] sm:$0xff] %vm568_vm6, %v600_v51  ;;  %611 = vst.msk [vmem:[%s212_s22 + $0x10] sm:$0xff] %vm568_vm6, %v602_v52 }
 0x43b   : > { %v626_v53 = vpop.permute.xlu0 %625  ;;  %v604_v54 = vpop.permute.xlu1 %603 }
 0x43c   : > { %637 = vst.msk [vmem:[%s1523_s6] sm:$0xff] %vm568_vm6, %v626_v53  ;;  %612 = vst.msk [vmem:[%s212_s22 + $0x18] sm:$0xff] %vm568_vm6, %v604_v54 }
 0x43d   : > { %1033 = shalt.err (!%p1030_p13)
}
 0x43e   : > { %s1034_s14 = scalar_lea.hbm %s1520_s9, 512  ;;  %s1038_s29 = scalar_lea.hbm %s1617_s3, 1024 }
 0x43f   : > { %p1035_p0 = scmp.ne.s32.totalorder %s1520_s9, %s1034_s14  ;;  %p1039_p3 = scmp.lt.u32.totalorder %s1520_s9, %s1617_s3 }
 0x440   : > { %p1040_p4 = scmp.lt.u32.totalorder %s1038_s29, %s1034_s14  ;;  %p1042_p8 = scmp.lt.u32.totalorder %s1034_s14, %s1520_s9 }
 0x441   : > { %p1036_p1 = pnand %p1035_p0, %p1198_p5 }
 0x442   : > { %p1041_p7 = por %p1040_p4, %p1039_p3 }
 0x443   : > { %p1037_p2 = pneg %p1036_p1 }
 0x444   : > { %p1043_p9 = por %p1042_p8, %p1041_p7 }
 0x446   : > { %p1044_p10 = pnand %p1043_p9, %p1037_p2 }
 0x448   : > { %1047 = shalt.err (!%p1044_p10)
}
 0x449   : > { %903 = dma.vmem_to_hbm [thread:$0]  (%p1198_p5), %s1514_s7, 512, %s1520_s9, %s1456_s10, %s1128_s11, %s1128_s11, %s1129_s5   ;;  %v630_v55 = vpop.permute.xlu0 %629  ;;  %v628_v56 = vpop.permute.xlu1 %627 }
 0x44a   : > { %s718_s19 = sshll.u32 %s1523_s6, 4  ;;  %639 = vst.msk [vmem:[%s1523_s6 + $0x10] sm:$0xff] %vm568_vm6, %v630_v55  ;;  %638 = vst.msk [vmem:[%s1523_s6 + $0x8] sm:$0xff] %vm568_vm6, %v628_v56  ;;  %s1564_s14 = scalar_lea.hbm %s1618_s4, %s1424_s28  ;;  %s1558_s19 = int_to_ptr.vmem [resolvable:$true] %s718_s19 }
 0x44b   : > { %s657_s10 = scalar_lea.sflag [#allocation8], %s1395_s13  ;;  %s1048_s7 = scalar_lea.vmem %s1558_s19, 512 }
 0x44c   : > { %p1049_p11 = scmp.ne.s32.totalorder %s1558_s19, %s1048_s7  ;;  %s1132_s9 = smov [#allocation7]  }
 0x44d   : > { %v632_v57 = vpop.permute.xlu1 %631  ;;  %s1052_s27 = sshll.u32 %s1132_s9, 4  ;;  %s1053_s27 = int_to_ptr.vmem [resolvable:$false] %s1052_s27 }
 0x44e   : > { %640 = vst.msk [vmem:[%s1523_s6 + $0x18] sm:$0xff] %vm568_vm6, %v632_v57  ;;  %p1050_p12 = pnand %p1049_p11, %p1198_p5  ;;  %s1054_s22 = scalar_lea.vmem %s1053_s27, 1024 }
 0x44f   : > { %p1055_p0 = scmp.lt.s32.totalorder %s1558_s19, %s1053_s27  ;;  %p1056_p1 = scmp.lt.s32.totalorder %s1054_s22, %s1048_s7 }
 0x450   : > { %p1051_p13 = pneg %p1050_p12 }
 0x451   : > { %p1057_p2 = por %p1056_p1, %p1055_p0 }
 0x453   : > { %p1058_p3 = pnand %p1057_p2, %p1051_p13 }
 0x455   : > { %1061 = shalt.err (!%p1058_p3)
}
 0x456   : > { %s1062_s28 = scalar_lea.hbm %s1564_s14, 512  ;;  %s1066_s30 = scalar_lea.hbm %s1618_s4, 1024 }
 0x457   : > { %p1063_p4 = scmp.ne.s32.totalorder %s1564_s14, %s1062_s28  ;;  %p1067_p9 = scmp.lt.u32.totalorder %s1564_s14, %s1618_s4 }
 0x458   : > { %p1068_p10 = scmp.lt.u32.totalorder %s1066_s30, %s1062_s28  ;;  %p1070_p12 = scmp.lt.u32.totalorder %s1062_s28, %s1564_s14 }
 0x459   : > { %p1064_p7 = pnand %p1063_p4, %p1198_p5 }
 0x45a   : > { %p1069_p11 = por %p1068_p10, %p1067_p9 }
 0x45b   : > { %p1065_p8 = pneg %p1064_p7 }
 0x45c   : > { %p1071_p13 = por %p1070_p12, %p1069_p11 }
 0x45e   : > { %p1072_p0 = pnand %p1071_p13, %p1065_p8 }
 0x460   : > { %1075 = shalt.err (!%p1072_p0)
}
 0x461   : > { %904 = dma.vmem_to_hbm [thread:$0]  (%p1198_p5), %s1558_s19, 512, %s1564_s14, %s657_s10, %s1128_s11, %s1128_s11, %s1129_s5  }
 0x462 PF: > { %p922_p1 = scmp.ge.s32.totalorder %s1118_s18, 2  ;;  %s733_s23 = sand.u32 1, %s1106_s15  }
 0x463   : > { %s734_s7 = scalar_lea.sflag [#allocation3], %s733_s23 }
 0x464   : > { %p910_p2 = pnand %p922_p1, %p1202_p6 }
 0x466   : > { %1093 = dma.done.wait (!%p910_p2), %s734_s7, 512  }
 0x467   : > { %1095 = vsyncadd (!%p910_p2), %s734_s7, 4294966784  ;;  %s742_s25 = sand.u32 1, %s873_s20  }
 0x468   : > { %s743_s9 = scalar_lea.sflag [#allocation5], %s742_s25 }
 0x469   : > { %1097 = dma.done.wait (!%p910_p2), %s743_s9, 1024  }
 0x46a   : > { %1099 = vsyncadd (!%p910_p2), %s743_s9, 4294966272  ;;  %s761_s13 = scalar_lea.sflag [#allocation8], %s733_s23 }
 0x46b   : > { %1101 = dma.done.wait (!%p910_p2), %s761_s13, 512  }
 0x46c   : > { %1103 = vsyncadd (!%p910_p2), %s761_s13, 4294966784  ;;  %p21_p5 = scmp.ge.s32.totalorder %s1183_s21, 4   ;;  %s1633_s15 = smov %s1110_s16 }
 0x46d   : > { %s1634_s16 = smov %s1114_s17  ;;  %s1635_s17 = smov %s1196_s24 }
 0x46e   : > { %s1636_s18 = smov %s1183_s21  ;;  %23 = sbr.rel (!%p21_p5) target bundleno = 7 (0x7), region = 108 }
 0x475   :  { %766 = vsyncpa [#allocation3], 1 }
 0x476   :  { %768 = vsyncpa [#allocation3 + $0x1], 1 }
 0x477   :  { %769 = vsyncpa [#allocation5], 1 }
 0x478   :  { %771 = vsyncpa [#allocation5 + $0x1], 1 }
 0x479   :  { %772 = vsyncpa [#allocation8], 1 }
 0x47a   :  { %774 = vsyncpa [#allocation8 + $0x1], 1 }

</bundles_post_ra>
